<compile_context>
chip_gen: v7x
topology: tpu7x:2x2x1
jax: 0.10.0
libtpu: 0.0.40
codegen_flags: <defaults>
</compile_context>

<pallas_src>
import functools

import jax
import jax.numpy as jnp
from jax.experimental import pallas as pl
from jax.experimental.pallas import tpu as pltpu


def _pick_lane_split(H, W):
    """Factor H*W into (R rows, sL lanes) with R * sL == H * W (no padding)."""
    HW = H * W
    if HW % 128 == 0:
        for min_rows in (16, 8):
            for c in (1024, 512, 256, 128):
                if HW % c == 0 and HW // c >= min_rows:
                    return HW // c, c
        return HW // 128, 128          # tiny spatial: maximize sublane rows
    # H*W not 128-aligned: keep (H, W) as (rows, lanes); the block's last dim
    # equals the full array dim, which is legal for any W.
    return H, W


def _pick_row_block(R, budget_rows, row_mult, want_split):
    """Rows per block: either the full R, or a multiple of row_mult (< R)."""
    if R <= row_mult:
        return R
    cap = min(max(row_mult, budget_rows), R)
    if want_split:
        cap = min(cap, R - 1)          # guarantee >= 2 row blocks (megacore)
    if cap >= R:
        return R
    return max(row_mult, (cap // row_mult) * row_mult)


def _dispreg_oneshot_kernel(x_ref, o_ref, *, n_par):
    """Single pass: x_ref (1, D, sR, sL) -> o_ref (1, sR, sL) f32, written once."""
    n_disp = x_ref.shape[1]
    parts = [None] * n_par
    for d in range(1, n_disp):                    # d == 0 has weight 0: skip
        term = x_ref[0, d].astype(jnp.float32) * float(d)
        slot = d % n_par
        parts[slot] = term if parts[slot] is None else parts[slot] + term
    parts = [p for p in parts if p is not None]
    if not parts:                                 # maxdisp == 1 -> all zeros
        o_ref[0] = jnp.zeros(o_ref.shape[1:], o_ref.dtype)
        return
    total = parts[0]
    for p in parts[1:]:
        total = total + p
    o_ref[0] = total


def _dispreg_accum_kernel(x_ref, o_ref, *, tile_d, n_disp, n_par):
    """D-tiled accumulation: x_ref (1, tD, sR, sL); o_ref (1, sR, sL) f32 acc."""
    k = pl.program_id(2)

    @pl.when(k == 0)
    def _():
        o_ref[...] = jnp.zeros(o_ref.shape, o_ref.dtype)

    base = k * tile_d                              # global disparity offset
    need_mask = (n_disp % tile_d) != 0             # static: ragged D tail only
    parts = [None] * n_par
    for d in range(tile_d):
        w = base + d                               # global disparity index
        xs = x_ref[0, d].astype(jnp.float32)
        if need_mask:
            # Edge-block contents past d == n_disp - 1 are unspecified: mask
            # the data (not just the weight) so stray NaN/Inf cannot leak in.
            xs = jnp.where(w < n_disp, xs, 0.0)
        term = xs * w.astype(jnp.float32)
        slot = d % n_par
        parts[slot] = term if parts[slot] is None else parts[slot] + term
    total = parts[0]
    for p in parts[1:]:
        if p is not None:
            total = total + p
    o_ref[0] += total


def disparity_regression(x, *, block_bytes=4 * 1024 * 1024,
                         vmem_limit_bytes=32 * 1024 * 1024):
    """x: (B, D, H, W) float -> (B, H, W) f32; out[b,h,w] = sum_d d * x[b,d,h,w]."""
    B, D, H, W = x.shape
    itemsize = jnp.dtype(x.dtype).itemsize
    row_mult = {4: 8, 2: 16, 1: 32}.get(itemsize, 8)   # sublane packing

    R, sL = _pick_lane_split(H, W)
    xr = x.reshape(B, D, R, sL)                    # free: R * sL == H * W

    row_bytes = sL * itemsize                      # one row of one d-slice
    rows_budget = block_bytes // max(1, D * row_bytes)
    single_pass = (rows_budget >= min(R, row_mult)) and (D <= 256)

    if single_pass:
        tile_d = D
        sR = _pick_row_block(R, rows_budget, row_mult, want_split=(B == 1))
    else:
        sR = R if R <= row_mult else row_mult
        tile_d = max(1, min(D, 256, block_bytes // (sR * row_bytes)))

    nR = pl.cdiv(R, sR)
    slice_vregs = -(-(sR * sL) // 1024)            # f32 vregs per (sR, sL) slice
    n_par = max(1, min(4, tile_d, 4 // max(1, slice_vregs)))

    out_shape = jax.ShapeDtypeStruct((B, R, sL), jnp.float32)

    if single_pass:
        out = pl.pallas_call(
            functools.partial(_dispreg_oneshot_kernel, n_par=n_par),
            out_shape=out_shape,
            grid_spec=pltpu.PrefetchScalarGridSpec(
                num_scalar_prefetch=0,
                grid=(B, nR),
                in_specs=[pl.BlockSpec((1, D, sR, sL),
                                       lambda b, r: (b, 0, r, 0))],
                out_specs=pl.BlockSpec((1, sR, sL), lambda b, r: (b, r, 0)),
            ),
            compiler_params=pltpu.CompilerParams(
                dimension_semantics=("parallel", "parallel"),
                vmem_limit_bytes=vmem_limit_bytes,
            ),
        )(xr)
    else:
        nD = pl.cdiv(D, tile_d)
        out = pl.pallas_call(
            functools.partial(_dispreg_accum_kernel, tile_d=tile_d,
                              n_disp=D, n_par=n_par),
            out_shape=out_shape,
            grid_spec=pltpu.PrefetchScalarGridSpec(
                num_scalar_prefetch=0,
                grid=(B, nR, nD),
                in_specs=[pl.BlockSpec((1, tile_d, sR, sL),
                                       lambda b, r, k: (b, k, r, 0))],
                out_specs=pl.BlockSpec((1, sR, sL), lambda b, r, k: (b, r, 0)),
            ),
            compiler_params=pltpu.CompilerParams(
                dimension_semantics=("parallel", "parallel", "arbitrary"),
                vmem_limit_bytes=vmem_limit_bytes,
            ),
        )(xr)

    return out.reshape(B, H, W)


def disparity_regression_ref(x):
    B, D, H, W = x.shape
    disp = jnp.arange(D, dtype=jnp.float32).reshape(1, D, 1, 1)
    return jnp.sum(x.astype(jnp.float32) * disp, axis=1)


if __name__ == "__main__":
    key = jax.random.PRNGKey(0)

    tests = [
        # (shape, kwargs)
        ((2, 4, 16, 16), {}),            # baseline module-consistent shape
        ((1, 48, 40, 64), {}),           # B==1 row split (megacore) + ragged rows
        ((1, 8, 64, 256), {}),           # wide lane split (sL = 1024)
        ((2, 5, 7, 9), {}),              # H*W not 128-aligned: (H, W) fallback
        # Forced multi-pass accumulation path with a ragged D tail:
        ((1, 50, 40, 64), {"block_bytes": 64 * 1024}),
    ]

    for (B, maxdisp, H, W), kwargs in tests:
        key, sub = jax.random.split(key)
        logits = jax.random.normal(sub, (B, maxdisp, H, W), dtype=jnp.float32)
        x = jax.nn.softmax(logits, axis=1)        # cost-volume probabilities

        out = jax.block_until_ready(disparity_regression(x, **kwargs))
        ref = disparity_regression_ref(x)

        assert out.shape == (B, H, W), (out.shape, (B, H, W))
        assert jnp.allclose(out, ref, atol=1e-4, rtol=1e-5), (
            f"mismatch at {(B, maxdisp, H, W)}: "
            f"max abs err {float(jnp.max(jnp.abs(out - ref)))}")

    print("KERNEL_OK")
</pallas_src>

<mosaic_0001>
module attributes {stable_mosaic.version = 11 : i64} {
  func.func @_dispreg_oneshot_kernel(%arg0: i32, %arg1: i32, %arg2: memref<1x4x2x128xf32, #tpu.memory_space<vmem>>, %arg3: memref<1x2x128xf32, #tpu.memory_space<vmem>>) attributes {dimension_semantics = [#tpu.dimension_semantics<parallel>, #tpu.dimension_semantics<parallel>], iteration_bounds = array<i64: 2, 1>, scalar_prefetch = 0 : i64, scratch_operands = 0 : i64, tpu.core_type = #tpu.core_type<tc>, window_params = [{transform_indices = @transform_0, window_bounds = array<i64: 1, 4, 2, 128>}, {transform_indices = @transform_1, window_bounds = array<i64: 1, 2, 128>}]} {
    %c0 = arith.constant 0 : index
    %c1 = arith.constant 1 : index
    %c0_0 = arith.constant 0 : index
    %c0_1 = arith.constant 0 : index
    %0 = vector.load %arg2[%c0, %c1, %c0_0, %c0_1] : memref<1x4x2x128xf32, #tpu.memory_space<vmem>>, vector<1x1x2x128xf32>
    %1 = vector.shape_cast %0 : vector<1x1x2x128xf32> to vector<2x128xf32>
    %cst = arith.constant 1.000000e+00 : f32
    %2 = vector.broadcast %cst : f32 to vector<2x128xf32>
    %3 = arith.mulf %1, %2 : vector<2x128xf32>
    %c0_2 = arith.constant 0 : index
    %c2 = arith.constant 2 : index
    %c0_3 = arith.constant 0 : index
    %c0_4 = arith.constant 0 : index
    %4 = vector.load %arg2[%c0_2, %c2, %c0_3, %c0_4] : memref<1x4x2x128xf32, #tpu.memory_space<vmem>>, vector<1x1x2x128xf32>
    %5 = vector.shape_cast %4 : vector<1x1x2x128xf32> to vector<2x128xf32>
    %cst_5 = arith.constant 2.000000e+00 : f32
    %6 = vector.broadcast %cst_5 : f32 to vector<2x128xf32>
    %7 = arith.mulf %5, %6 : vector<2x128xf32>
    %c0_6 = arith.constant 0 : index
    %c3 = arith.constant 3 : index
    %c0_7 = arith.constant 0 : index
    %c0_8 = arith.constant 0 : index
    %8 = vector.load %arg2[%c0_6, %c3, %c0_7, %c0_8] : memref<1x4x2x128xf32, #tpu.memory_space<vmem>>, vector<1x1x2x128xf32>
    %9 = vector.shape_cast %8 : vector<1x1x2x128xf32> to vector<2x128xf32>
    %cst_9 = arith.constant 3.000000e+00 : f32
    %10 = vector.broadcast %cst_9 : f32 to vector<2x128xf32>
    %11 = arith.mulf %9, %10 : vector<2x128xf32>
    %12 = arith.addf %3, %7 : vector<2x128xf32>
    %13 = arith.addf %12, %11 : vector<2x128xf32>
    %c0_10 = arith.constant 0 : index
    %c0_11 = arith.constant 0 : index
    %c0_12 = arith.constant 0 : index
    %14 = vector.load %arg3[%c0_10, %c0_11, %c0_12] : memref<1x2x128xf32, #tpu.memory_space<vmem>>, vector<1x2x128xf32>
    %15 = vector.shape_cast %14 : vector<1x2x128xf32> to vector<2x128xf32>
    %16 = vector.shape_cast %13 : vector<2x128xf32> to vector<1x2x128xf32>
    tpu.vector_store %arg3[%c0_10, %c0_11, %c0_12], %16 {strides = array<i32>} : memref<1x2x128xf32, #tpu.memory_space<vmem>>, vector<1x2x128xf32>,
    return
  }
  func.func @transform_0(%arg0: i32, %arg1: i32) -> (i32, i32, i32, i32) {
    %c0_i32 = arith.constant 0 : i32
    %c0_i32_0 = arith.constant 0 : i32
    %c0_i32_1 = arith.constant 0 : i32
    return %arg0, %c0_i32, %arg1, %c0_i32_0 : i32, i32, i32, i32
  }
  func.func @transform_1(%arg0: i32, %arg1: i32) -> (i32, i32, i32) {
    %c0_i32 = arith.constant 0 : i32
    %c0_i32_0 = arith.constant 0 : i32
    return %arg0, %arg1, %c0_i32 : i32, i32, i32
  }
}

</mosaic_0001>

<bundles_post_ra>
// kernel: tpu_custom_call.1
= control target key start
LH: loop header
LB: loop body
LE: loop exit
PB: predicated region body
PF: predicated region fallthrough
CT: control target
= control target key end

     0   :  { %6 = vsyncpa [#allocation3], 0  ;;  %s643_s0 = inlined_call_operand.hbm [shape: f32[2,4,2,128], index: 0, kind: input, shape index: {}]   ;;  %s644_s1 = inlined_call_operand.hbm [shape: f32[2,2,128], index: 1, kind: output, shape index: {}]  }
   0x1   :  { %8 = vsyncpa [#allocation3 + $0x1], 0 }
   0x2   :  { %9 = vsyncpa [#allocation4], 0 }
   0x3   :  { %11 = vsyncpa [#allocation4 + $0x1], 0  ;;  %s469_s6 = smov 0   ;;  %s471_s7 = smov 0  }
   0x4   :  { %s473_s8 = smov 0   ;;  %s475_s9 = smov 0  }
   0x5   :  { %s477_s10 = smov 0   ;;  %s479_s11 = smov 0  }
   0x6 LB: > { %s259_s12 = sadd.s32 4294967295, %s453_s11   ;;  %s260_s13 = sadd.s32 4294967294, %s453_s11   ;;  %s453_s11 = sphi %s479_s11, %s17_s11   ;;  %s449_s10 = sphi %s477_s10, %s659_s10   ;;  %s445_s9 = sphi %s475_s9, %s658_s9   ;;  %s441_s8 = sphi %s473_s8, %s657_s8   ;;  %s437_s7 = sphi %s471_s7, %s656_s7   ;;  %s433_s6 = sphi %s469_s6, %s655_s6  }
   0x7   : > { %s29_s14 = sadd.s32 1, %s449_s10  ;;  %s38_s15 = sadd.s32 1, %s441_s8 }
   0x8   : > { %p31_p0 = scmp.ge.s32.totalorder %s29_s14, 2  ;;  %p45_p1 = scmp.ne.s32.totalorder %s441_s8, %s437_s7 }
   0x9   : > { %p46_p2 = scmp.eq.s32.totalorder %s453_s11, 0  ;;  %p51_p3 = scmp.ne.s32.totalorder %s437_s7, %s433_s6 }
   0xa   : > { %s661_s14 = smov (%p31_p0, %s29_s14), 0  ;;  %p52_p5 = scmp.eq.s32.totalorder %s259_s12, 0 }
   0xb   : > { %p510_p4 = por %p46_p2, %p45_p1  ;;  %s33_s17 = ssub.s32 %s449_s10, %s661_s14 }
   0xc   : > { %p77_p6 = scmp.eq.s32.totalorder %s259_s12, 1  ;;  %p36_p7 = scmp.eq.s32.totalorder %s33_s17, 0 }
   0xd   : > { %p516_p8 = por %p52_p5, %p51_p3  ;;  %p83_p10 = scmp.eq.s32.totalorder %s260_s13, 1 }
   0xe   : > { %p520_p9 = por %p77_p6, %p45_p1  ;;  %p289_p13 = scmp.lt.s32.totalorder %s453_s11, 2 }
   0xf   : > { %s525_s20 = scalar_select %p36_p7, %s441_s8, %s38_s15  }
  0x10   : > { %s648_s19 = scalar_select %p520_p9, 1, 0 }
  0x11   : > { %p527_p11 = por %p83_p10, %p51_p3  ;;  %s103_s22 = sand.u32 1, %s441_s8  }
  0x12   : > { %s263_s23 = sshll.u32 %s103_s22, 3  ;;  %s276_s24 = sshll.u32 %s449_s10, 7 }
  0x13   : > { %s649_s21 = scalar_select %p527_p11, 1, 0 }
  0x14   : > { %s538_s27 = scalar_lea.hbm %s643_s0, %s276_s24  ;;  %s107_s28 = scalar_lea.vmem [#allocation2], %s263_s23 }
  0x15   : > { %s115_s29 = sshll.u32 %s107_s28, 4  ;;  %p544_p0 = pnand %p289_p13, %p510_p4  ;;  %s540_s29 = int_to_ptr.vmem [resolvable:$true] %s115_s29 }
  0x16   : > { %s549_s2 = scalar_lea.sflag [#allocation3], %s103_s22  ;;  %s341_s3 = scalar_lea.hbm %s538_s27, 128 }
  0x17   : > { %p342_p2 = scmp.ne.s32.totalorder %s538_s27, %s341_s3  ;;  %p343_p3 = pneg %p544_p0 }
  0x18   : > { %s346_s12 = scalar_lea.hbm %s643_s0, 256  ;;  %p347_p4 = scmp.lt.u32.totalorder %s538_s27, %s643_s0 }
  0x19   : > { %p344_p5 = pnand %p343_p3, %p342_p2  ;;  %p348_p7 = scmp.lt.u32.totalorder %s346_s12, %s341_s3 }
  0x1a   : > { %p350_p13 = scmp.lt.u32.totalorder %s341_s3, %s538_s27 }
  0x1b   : > { %p345_p6 = pneg %p344_p5  ;;  %p349_p10 = por %p348_p7, %p347_p4 }
  0x1d   : > { %p351_p12 = por %p350_p13, %p349_p10 }
  0x1f   : > { %p352_p1 = pnand %p351_p12, %p345_p6 }
  0x21   : > { %355 = shalt.err (!%p352_p1)
}
  0x22   : > { %s356_s16 = scalar_lea.vmem %s540_s29, 128  ;;  %s455_s17 = smov [#allocation2]  }
  0x23   : > { %p357_p2 = scmp.ne.s32.totalorder %s540_s29, %s356_s16  ;;  %s361_s22 = sshll.u32 %s455_s17, 4  ;;  %s362_s22 = int_to_ptr.vmem [resolvable:$false] %s361_s22 }
  0x24   : > { %s363_s23 = scalar_lea.vmem %s362_s22, 256  ;;  %p364_p9 = scmp.lt.s32.totalorder %s540_s29, %s362_s22 }
  0x25   : > { %p359_p5 = pnand %p357_p2, %p343_p3  ;;  %p365_p4 = scmp.lt.s32.totalorder %s363_s23, %s356_s16 }
  0x27   : > { %p360_p11 = pneg %p359_p5  ;;  %p366_p7 = por %p365_p4, %p364_p9 }
  0x29   : > { %p367_p10 = pnand %p366_p7, %p360_p11 }
  0x2b   : > { %370 = shalt.err (!%p367_p10)
}
  0x2c   : > { %s456_s24 = smov 32   ;;  %s457_s25 = smov 2  }
  0x2d   : > { %284 = dma.hbm_to_vmem [thread:$0]  (!%p544_p0), %s538_s27, 128, %s540_s29, %s549_s2, %s456_s24, %s456_s24, %s457_s25  }
  0x2e   : > { %p123_p12 = scmp.lt.s32.totalorder %s453_s11, 3  ;;  %p651_p1 = scmp.ge.s32.totalorder %s453_s11, 1 }
  0x30   : > { %p124_p3 = pnand %p651_p1, %p123_p12 }
  0x31   : > { %s581_s26 = sand.u32 (!%p124_p3), 1, %s437_s7  }
  0x32   : > { %127 = sbr.rel (%p124_p3) target bundleno = 85 (0x55), region = 24  ;;  %s267_s28 = sshll.u32 (!%p124_p3), %s581_s26, 3 }
  0x33   : > { %s130_s3 = scalar_lea.sflag (!%p124_p3), [#allocation3], %s581_s26  ;;  %s133_s4 = scalar_lea.vmem (!%p124_p3), [#allocation2], %s267_s28 }
  0x39   : > { %424 = dma.done.wait (%p516_p8), %s130_s3, 128  }
  0x3a   : > { %426 = vsyncadd (%p516_p8), %s130_s3, 4294967168  ;;  %s268_s27 = sshll.u32 %s581_s26, 1  ;;  %v269_v0 = vld [vmem:[%s133_s4 + $0x2] sm:$0x3]  ;;  %v270_v1 = vld [vmem:[%s133_s4 + $0x4] sm:$0x3] }
  0x3b   : > { %v271_v2 = vld [vmem:[%s133_s4 + $0x6] sm:$0x3]  ;;  %v156_v3 = vmul.f32 2.0, %v270_v1  ;;  %s151_s29 = scalar_lea.vmem [#allocation5], %s268_s27  ;;  %s273_s2 = sshll.u32 %s445_s9, 5 }
  0x3c   : > { %v159_v4 = vmul.f32 3.0, %v271_v2  ;;  %s178_s30 = sshll.u32 %s151_s29, 4  ;;  %s596_s12 = scalar_lea.hbm %s644_s1, %s273_s2  ;;  %s591_s30 = int_to_ptr.vmem [resolvable:$true] %s178_s30 }
  0x3d   : > { %v160_v5 = vadd.f32 %v269_v0, %v156_v3  ;;  %s164_s13 = scalar_lea.sflag [#allocation4], %s581_s26  ;;  %s371_s15 = scalar_lea.vmem %s591_s30, 32 }
  0x3e   : > { %p372_p8 = scmp.ne.s32.totalorder %s591_s30, %s371_s15  ;;  %p652_p9 = scmp.ne.s32.totalorder %s648_s19, 0 }
  0x3f   : > { %v161_v6 = vadd.f32 %v160_v5, %v159_v4  ;;  %s458_s9 = smov [#allocation5]  }
  0x40   : > { %p373_p11 = pnand %p372_p8, %p652_p9  ;;  %s375_s16 = sshll.u32 %s458_s9, 4  ;;  %s376_s16 = int_to_ptr.vmem [resolvable:$false] %s375_s16 }
  0x41   : > { %162 = vst [vmem:[%s151_s29] sm:$0x3] %v161_v6  ;;  %s377_s17 = scalar_lea.vmem %s376_s16, 64  ;;  %p378_p6 = scmp.lt.s32.totalorder %s591_s30, %s376_s16 }
  0x42   : > { %p374_p0 = pneg %p373_p11  ;;  %p379_p13 = scmp.lt.s32.totalorder %s377_s17, %s371_s15 }
  0x44   : > { %p380_p2 = por %p379_p13, %p378_p6 }
  0x46   : > { %p381_p5 = pnand %p380_p2, %p374_p0 }
  0x48   : > { %384 = shalt.err (!%p381_p5)
}
  0x49   : > { %s385_s22 = scalar_lea.hbm %s596_s12, 32  ;;  %s389_s25 = scalar_lea.hbm %s644_s1, 64 }
  0x4a   : > { %p386_p4 = scmp.ne.s32.totalorder %s596_s12, %s385_s22  ;;  %p390_p12 = scmp.lt.u32.totalorder %s596_s12, %s644_s1 }
  0x4b   : > { %p391_p1 = scmp.lt.u32.totalorder %s389_s25, %s385_s22  ;;  %p393_p8 = scmp.lt.u32.totalorder %s385_s22, %s596_s12 }
  0x4c   : > { %p387_p7 = pnand %p386_p4, %p652_p9 }
  0x4d   : > { %p392_p3 = por %p391_p1, %p390_p12 }
  0x4e   : > { %p388_p10 = pneg %p387_p7 }
  0x4f   : > { %p394_p11 = por %p393_p8, %p392_p3 }
  0x51   : > { %p395_p0 = pnand %p394_p11, %p388_p10 }
  0x53   : > { %398 = shalt.err (!%p395_p0)
}
  0x54   : > { %279 = dma.vmem_to_hbm [thread:$0]  (%p652_p9), %s591_s30, 32, %s596_s12, %s164_s13  }
  0x55 PF: > { %s190_s3 = sand.u32 1, %s433_s6   ;;  %p653_p6 = scmp.ne.s32.totalorder %s649_s21, 0 }
  0x56   : > { %p654_p13 = scmp.ge.s32.totalorder %s453_s11, 2  ;;  %s191_s4 = scalar_lea.sflag [#allocation4], %s190_s3 }
  0x58   : > { %p286_p2 = pnand %p654_p13, %p653_p6 }
  0x5a   : > { %428 = dma.done.wait (!%p286_p2), %s191_s4, 32  }
  0x5b   : > { %430 = vsyncadd (!%p286_p2), %s191_s4, 4294967264  ;;  %s17_s11 = sadd.s32 1, %s453_s11   ;;  %s655_s6 = smov %s437_s7 }
  0x5c   : > { %p14_p5 = scmp.ge.s32.totalorder %s17_s11, 4   ;;  %s656_s7 = smov %s441_s8 }
  0x5d   : > { %s657_s8 = smov %s525_s20  ;;  %s658_s9 = smov %s449_s10 }
  0x5e   : > { %s659_s10 = smov %s661_s14  ;;  %16 = sbr.rel (!%p14_p5) target bundleno = 6 (0x6), region = 72 }
  0x65   :  { %196 = vsyncpa [#allocation3], 1 }
  0x66   :  { %198 = vsyncpa [#allocation3 + $0x1], 1 }
  0x67   :  { %199 = vsyncpa [#allocation4], 1 }
  0x68   :  { %201 = vsyncpa [#allocation4 + $0x1], 1 }

</bundles_post_ra>
